<compile_context>
chip_gen: v6e
topology: v6e:2x2x1
jax: 0.10.0
libtpu: 0.0.40
codegen_flags: <defaults>
</compile_context>

<pallas_src>
import functools

import numpy as np
import jax
import jax.numpy as jnp
from jax.experimental import pallas as pl
from jax.experimental.pallas import tpu as pltpu

KSIZE = 5
PAD = KSIZE // 2
NOISE_SIGMA = 0.1


def _gaussian_kernel_1d(ksize: int, sigma: float) -> np.ndarray:
    ax = np.arange(ksize, dtype=np.float64) - (ksize - 1) / 2.0
    g = np.exp(-(ax ** 2) / (2.0 * sigma ** 2))
    g /= g.sum()
    return g.astype(np.float32)


# Deterministic separable 5x5 Gaussian blur weights (the "internal_operator" parameters).
# outer(_BLUR_1D, _BLUR_1D) is exactly the normalized 2-D Gaussian kernel.
_BLUR_1D = _gaussian_kernel_1d(KSIZE, 1.0)


def _op_plus_noise_kernel(x_ref, noise_ref, out_ref, xpad_ref, *, B, H, W, noise_sigma):
    """One grid step = one block of B (n, c) image planes.

    x_ref     : VMEM (B, H, W)   input planes
    noise_ref : VMEM (B, H, W)   standard-normal noise
    out_ref   : VMEM (B, H, W)   output planes
    xpad_ref  : VMEM (B, H+2*PAD, W+2*PAD) scratch for in-kernel "same" zero padding
    """
    Hp, Wp = H + 2 * PAD, W + 2 * PAD

    # In-kernel zero padding (avoids a wrapper-side jnp.pad HBM round trip).
    xpad_ref[...] = jnp.zeros_like(xpad_ref)
    xpad_ref[:, PAD:PAD + H, PAD:PAD + W] = x_ref[...]
    xp = xpad_ref[...]  # (B, Hp, Wp), f32

    # Separable 5x5 Gaussian blur: horizontal 5-tap pass, then vertical 5-tap pass.
    h = jnp.zeros((B, Hp, W), dtype=jnp.float32)
    for kj in range(KSIZE):
        h = h + float(_BLUR_1D[kj]) * xp[:, :, kj:kj + W]

    acc = jnp.zeros((B, H, W), dtype=jnp.float32)
    for ki in range(KSIZE):
        acc = acc + float(_BLUR_1D[ki]) * h[:, ki:ki + H, :]

    # A(x) + noise_sigma * randn_like(A(x))  -- single fused VPU pass for the add.
    out_ref[...] = acc + noise_sigma * noise_ref[...]


def _pick_block_planes(P: int, H: int, W: int) -> int:
    """Largest divisor of P whose block footprint stays well under scoped VMEM on all TPU gens."""
    Hp, Wp = H + 2 * PAD, W + 2 * PAD
    # rough bytes/plane: double-buffered x/noise/out blocks + padded scratch + horizontal temp.
    per_plane = 4 * (2 * 3 * H * W + Hp * Wp + Hp * W)
    cap = max(1, (8 << 20) // per_plane)  # ~8 MiB budget: safe even on v7x (64 MiB VMEM / TC)
    best = 1
    for d in range(1, P + 1):
        if P % d == 0 and d <= cap:
            best = d
    return best


def operator_plus_noise(x: jax.Array, key: jax.Array,
                        noise_sigma: float = NOISE_SIGMA) -> jax.Array:
    """x: (N, C, H, W) float32, NCHW. Returns blur(x) + noise_sigma * N(0, 1)."""
    N, C, H, W = x.shape
    P = N * C
    Hp, Wp = H + 2 * PAD, W + 2 * PAD

    x2 = x.reshape(P, H, W).astype(jnp.float32)
    # Counter-based keyed RNG: independent of grid execution order, so "parallel" semantics are safe.
    noise = jax.random.normal(key, (P, H, W), dtype=jnp.float32)

    B = _pick_block_planes(P, H, W)
    grid = (P // B,)

    kernel = functools.partial(_op_plus_noise_kernel,
                               B=B, H=H, W=W, noise_sigma=float(noise_sigma))

    out = pl.pallas_call(
        kernel,
        out_shape=jax.ShapeDtypeStruct((P, H, W), jnp.float32),
        grid_spec=pltpu.PrefetchScalarGridSpec(
            num_scalar_prefetch=0,
            grid=grid,
            in_specs=[
                pl.BlockSpec((B, H, W), lambda i: (i, 0, 0)),
                pl.BlockSpec((B, H, W), lambda i: (i, 0, 0)),
            ],
            out_specs=pl.BlockSpec((B, H, W), lambda i: (i, 0, 0)),
            scratch_shapes=[pltpu.VMEM((B, Hp, Wp), jnp.float32)],
        ),
        compiler_params=pltpu.CompilerParams(
            dimension_semantics=("parallel",),  # blocks independent -> megacore-shardable on v7x
        ),
    )(x2, noise)

    return out.reshape(N, C, H, W)


if __name__ == "__main__":
    key = jax.random.PRNGKey(0)
    kx, knoise = jax.random.split(key)

    N, C, H, W = 2, 4, 16, 16
    x = jax.random.normal(kx, (N, C, H, W), dtype=jnp.float32)

    y = operator_plus_noise(x, knoise, noise_sigma=NOISE_SIGMA)
    y = jax.block_until_ready(y)

    assert y.shape == (N, C, H, W) and y.dtype == jnp.float32

    # Reference: depthwise 5x5 Gaussian blur (lax conv) + the identical noise draw.
    w2d = jnp.asarray(np.outer(_BLUR_1D, _BLUR_1D)).reshape(1, 1, KSIZE, KSIZE)
    w2d = jnp.tile(w2d, (C, 1, 1, 1))  # depthwise weights
    ref_blur = jax.lax.conv_general_dilated(
        x, w2d, window_strides=(1, 1), padding="SAME",
        dimension_numbers=("NCHW", "OIHW", "NCHW"), feature_group_count=C,
    )
    noise_ref = jax.random.normal(knoise, (N * C, H, W), dtype=jnp.float32).reshape(N, C, H, W)
    ref = ref_blur + NOISE_SIGMA * noise_ref

    # Separable vs direct 2-D accumulation order differs only at f32 rounding level.
    assert bool(jnp.allclose(y, ref, atol=1e-4, rtol=1e-4))

    print("KERNEL_OK")
</pallas_src>

<mosaic_0001>
module attributes {stable_mosaic.version = 11 : i64} {
  func.func @_op_plus_noise_kernel(%arg0: i32, %arg1: memref<8x16x16xf32, #tpu.memory_space<vmem>>, %arg2: memref<8x16x16xf32, #tpu.memory_space<vmem>>, %arg3: memref<8x16x16xf32, #tpu.memory_space<vmem>>, %arg4: memref<8x20x20xf32, #tpu.memory_space<vmem>>) attributes {dimension_semantics = [#tpu.dimension_semantics<parallel>], iteration_bounds = array<i64: 1>, scalar_prefetch = 0 : i64, scratch_operands = 1 : i64, tpu.core_type = #tpu.core_type<tc>, window_params = [{transform_indices = @transform_0, window_bounds = array<i64: 8, 16, 16>}, {transform_indices = @transform_1, window_bounds = array<i64: 8, 16, 16>}, {transform_indices = @transform_2, window_bounds = array<i64: 8, 16, 16>}]} {
    %cst = arith.constant 0.000000e+00 : f32
    %0 = vector.broadcast %cst : f32 to vector<8x20x20xf32>
    %c0 = arith.constant 0 : index
    %c0_0 = arith.constant 0 : index
    %c0_1 = arith.constant 0 : index
    %1 = vector.load %arg4[%c0, %c0_0, %c0_1] : memref<8x20x20xf32, #tpu.memory_space<vmem>>, vector<8x20x20xf32>
    tpu.vector_store %arg4[%c0, %c0_0, %c0_1], %0 {strides = array<i32>} : memref<8x20x20xf32, #tpu.memory_space<vmem>>, vector<8x20x20xf32>,
    %c0_2 = arith.constant 0 : index
    %c0_3 = arith.constant 0 : index
    %c0_4 = arith.constant 0 : index
    %2 = vector.load %arg1[%c0_2, %c0_3, %c0_4] : memref<8x16x16xf32, #tpu.memory_space<vmem>>, vector<8x16x16xf32>
    %c0_5 = arith.constant 0 : index
    %c2 = arith.constant 2 : index
    %c2_6 = arith.constant 2 : index
    %3 = vector.load %arg4[%c0_5, %c2, %c2_6] : memref<8x20x20xf32, #tpu.memory_space<vmem>>, vector<8x16x16xf32>
    tpu.vector_store %arg4[%c0_5, %c2, %c2_6], %2 {strides = array<i32>} : memref<8x20x20xf32, #tpu.memory_space<vmem>>, vector<8x16x16xf32>,
    %c0_7 = arith.constant 0 : index
    %c0_8 = arith.constant 0 : index
    %c0_9 = arith.constant 0 : index
    %4 = vector.load %arg4[%c0_7, %c0_8, %c0_9] : memref<8x20x20xf32, #tpu.memory_space<vmem>>, vector<8x20x20xf32>
    %cst_10 = arith.constant 0.000000e+00 : f32
    %5 = vector.broadcast %cst_10 : f32 to vector<8x20x16xf32>
    %6 = vector.extract_strided_slice %4 {offsets = [0, 0, 0], sizes = [8, 20, 16], strides = [1, 1, 1]} : vector<8x20x20xf32> to vector<8x20x16xf32>
    %cst_11 = arith.constant 0.054488685 : f32
    %7 = vector.broadcast %cst_11 : f32 to vector<8x20x16xf32>
    %8 = arith.mulf %7, %6 : vector<8x20x16xf32>
    %9 = arith.addf %5, %8 : vector<8x20x16xf32>
    %10 = vector.extract_strided_slice %4 {offsets = [0, 0, 1], sizes = [8, 20, 16], strides = [1, 1, 1]} : vector<8x20x20xf32> to vector<8x20x16xf32>
    %cst_12 = arith.constant 0.244201347 : f32
    %11 = vector.broadcast %cst_12 : f32 to vector<8x20x16xf32>
    %12 = arith.mulf %11, %10 : vector<8x20x16xf32>
    %13 = arith.addf %9, %12 : vector<8x20x16xf32>
    %14 = vector.extract_strided_slice %4 {offsets = [0, 0, 2], sizes = [8, 20, 16], strides = [1, 1, 1]} : vector<8x20x20xf32> to vector<8x20x16xf32>
    %cst_13 = arith.constant 0.402619958 : f32
    %15 = vector.broadcast %cst_13 : f32 to vector<8x20x16xf32>
    %16 = arith.mulf %15, %14 : vector<8x20x16xf32>
    %17 = arith.addf %13, %16 : vector<8x20x16xf32>
    %18 = vector.extract_strided_slice %4 {offsets = [0, 0, 3], sizes = [8, 20, 16], strides = [1, 1, 1]} : vector<8x20x20xf32> to vector<8x20x16xf32>
    %cst_14 = arith.constant 0.244201347 : f32
    %19 = vector.broadcast %cst_14 : f32 to vector<8x20x16xf32>
    %20 = arith.mulf %19, %18 : vector<8x20x16xf32>
    %21 = arith.addf %17, %20 : vector<8x20x16xf32>
    %22 = vector.extract_strided_slice %4 {offsets = [0, 0, 4], sizes = [8, 20, 16], strides = [1, 1, 1]} : vector<8x20x20xf32> to vector<8x20x16xf32>
    %cst_15 = arith.constant 0.054488685 : f32
    %23 = vector.broadcast %cst_15 : f32 to vector<8x20x16xf32>
    %24 = arith.mulf %23, %22 : vector<8x20x16xf32>
    %25 = arith.addf %21, %24 : vector<8x20x16xf32>
    %cst_16 = arith.constant 0.000000e+00 : f32
    %26 = vector.broadcast %cst_16 : f32 to vector<8x16x16xf32>
    %27 = vector.extract_strided_slice %25 {offsets = [0, 0, 0], sizes = [8, 16, 16], strides = [1, 1, 1]} : vector<8x20x16xf32> to vector<8x16x16xf32>
    %cst_17 = arith.constant 0.054488685 : f32
    %28 = vector.broadcast %cst_17 : f32 to vector<8x16x16xf32>
    %29 = arith.mulf %28, %27 : vector<8x16x16xf32>
    %30 = arith.addf %26, %29 : vector<8x16x16xf32>
    %31 = vector.extract_strided_slice %25 {offsets = [0, 1, 0], sizes = [8, 16, 16], strides = [1, 1, 1]} : vector<8x20x16xf32> to vector<8x16x16xf32>
    %cst_18 = arith.constant 0.244201347 : f32
    %32 = vector.broadcast %cst_18 : f32 to vector<8x16x16xf32>
    %33 = arith.mulf %32, %31 : vector<8x16x16xf32>
    %34 = arith.addf %30, %33 : vector<8x16x16xf32>
    %35 = vector.extract_strided_slice %25 {offsets = [0, 2, 0], sizes = [8, 16, 16], strides = [1, 1, 1]} : vector<8x20x16xf32> to vector<8x16x16xf32>
    %cst_19 = arith.constant 0.402619958 : f32
    %36 = vector.broadcast %cst_19 : f32 to vector<8x16x16xf32>
    %37 = arith.mulf %36, %35 : vector<8x16x16xf32>
    %38 = arith.addf %34, %37 : vector<8x16x16xf32>
    %39 = vector.extract_strided_slice %25 {offsets = [0, 3, 0], sizes = [8, 16, 16], strides = [1, 1, 1]} : vector<8x20x16xf32> to vector<8x16x16xf32>
    %cst_20 = arith.constant 0.244201347 : f32
    %40 = vector.broadcast %cst_20 : f32 to vector<8x16x16xf32>
    %41 = arith.mulf %40, %39 : vector<8x16x16xf32>
    %42 = arith.addf %38, %41 : vector<8x16x16xf32>
    %43 = vector.extract_strided_slice %25 {offsets = [0, 4, 0], sizes = [8, 16, 16], strides = [1, 1, 1]} : vector<8x20x16xf32> to vector<8x16x16xf32>
    %cst_21 = arith.constant 0.054488685 : f32
    %44 = vector.broadcast %cst_21 : f32 to vector<8x16x16xf32>
    %45 = arith.mulf %44, %43 : vector<8x16x16xf32>
    %46 = arith.addf %42, %45 : vector<8x16x16xf32>
    %c0_22 = arith.constant 0 : index
    %c0_23 = arith.constant 0 : index
    %c0_24 = arith.constant 0 : index
    %47 = vector.load %arg2[%c0_22, %c0_23, %c0_24] : memref<8x16x16xf32, #tpu.memory_space<vmem>>, vector<8x16x16xf32>
    %cst_25 = arith.constant 1.000000e-01 : f32
    %48 = vector.broadcast %cst_25 : f32 to vector<8x16x16xf32>
    %49 = arith.mulf %48, %47 : vector<8x16x16xf32>
    %50 = arith.addf %46, %49 : vector<8x16x16xf32>
    %c0_26 = arith.constant 0 : index
    %c0_27 = arith.constant 0 : index
    %c0_28 = arith.constant 0 : index
    %51 = vector.load %arg3[%c0_26, %c0_27, %c0_28] : memref<8x16x16xf32, #tpu.memory_space<vmem>>, vector<8x16x16xf32>
    tpu.vector_store %arg3[%c0_26, %c0_27, %c0_28], %50 {strides = array<i32>} : memref<8x16x16xf32, #tpu.memory_space<vmem>>, vector<8x16x16xf32>,
    return
  }
  func.func @transform_0(%arg0: i32) -> (i32, i32, i32) {
    %c0_i32 = arith.constant 0 : i32
    %c0_i32_0 = arith.constant 0 : i32
    %c0_i32_1 = arith.constant 0 : i32
    return %arg0, %c0_i32, %c0_i32_0 : i32, i32, i32
  }
  func.func @transform_1(%arg0: i32) -> (i32, i32, i32) {
    %c0_i32 = arith.constant 0 : i32
    %c0_i32_0 = arith.constant 0 : i32
    %c0_i32_1 = arith.constant 0 : i32
    return %arg0, %c0_i32, %c0_i32_0 : i32, i32, i32
  }
  func.func @transform_2(%arg0: i32) -> (i32, i32, i32) {
    %c0_i32 = arith.constant 0 : i32
    %c0_i32_0 = arith.constant 0 : i32
    %c0_i32_1 = arith.constant 0 : i32
    return %arg0, %c0_i32, %c0_i32_0 : i32, i32, i32
  }
}

</mosaic_0001>

<bundles_post_ra>
// kernel: tpu_custom_call.1
= control target key start
LH: loop header
LB: loop body
LE: loop exit
PB: predicated region body
PF: predicated region fallthrough
CT: control target
= control target key end

     0   :  { %7 = vsyncpa [#allocation4], 0  ;;  %s2075_s0 = inlined_call_operand.hbm [shape: f32[8,16,16], index: 0, kind: input, shape index: {}]   ;;  %s2076_s1 = inlined_call_operand.hbm [shape: f32[8,16,16], index: 1, kind: input, shape index: {}]   ;;  %s2077_s2 = inlined_call_operand.hbm [shape: f32[8,16,16], index: 2, kind: output, shape index: {}]  }
   0x1   :  { %8 = vsyncpa [#allocation7], 0 }
   0x2   :  { %9 = vsyncpa [#allocation5], 0  ;;  %s1351_s9 = smov [#allocation3]  }
   0x3   :  { %s15_s10 = sshll.u32 %s1351_s9, 4  ;;  %s16_s10 = int_to_ptr.vmem [resolvable:$true] %s15_s10 }
   0x4   :  { %s1293_s11 = scalar_lea.vmem %s16_s10, 2048  ;;  %p1298_p1 = scmp.lt.s32.totalorder %s16_s10, %s16_s10 }
   0x5   :  { %p1294_p0 = scmp.ne.s32.totalorder %s16_s10, %s1293_s11  ;;  %p1299_p2 = scmp.lt.s32.totalorder %s1293_s11, %s1293_s11 }
   0x7   :  { %p1300_p3 = por %p1299_p2, %p1298_p1 }
   0x9   :  { %p1301_p4 = pnand %p1300_p3, %p1294_p0 }
   0xb   :  { %1304 = shalt.err (!%p1301_p4)
}
   0xc   :  { %s1352_s12 = smov 128   ;;  %s1353_s13 = smov 8  }
   0xd   :  { %21 = dma.hbm_to_vmem [thread:$0]  %s2075_s0, 2048, %s16_s10, [#allocation4], %s1352_s12, %s1352_s12, %s1353_s13  }
   0xe   :  { %s1354_s16 = smov [#allocation6]  }
   0xf   :  { %s27_s17 = sshll.u32 %s1354_s16, 4  ;;  %s28_s17 = int_to_ptr.vmem [resolvable:$true] %s27_s17 }
  0x10   :  { %s1313_s18 = scalar_lea.vmem %s28_s17, 2048  ;;  %p1318_p6 = scmp.lt.s32.totalorder %s28_s17, %s28_s17 }
  0x11   :  { %p1314_p5 = scmp.ne.s32.totalorder %s28_s17, %s1313_s18  ;;  %p1319_p7 = scmp.lt.s32.totalorder %s1313_s18, %s1313_s18 }
  0x13   :  { %p1320_p8 = por %p1319_p7, %p1318_p6 }
  0x15   :  { %p1321_p9 = pnand %p1320_p8, %p1314_p5 }
  0x17   :  { %1324 = shalt.err (!%p1321_p9)
}
  0x18   :  { %33 = dma.hbm_to_vmem [thread:$0]  %s2076_s1, 2048, %s28_s17, [#allocation7], %s1352_s12, %s1352_s12, %s1353_s13  }
  0x19   :  { %1345 = dma.done.wait [#allocation4], 2048  }
  0x1a   :  { %1346 = vsyncadd [#allocation4], 4294965248 }
  0x1b   :  { %1347 = dma.done.wait [#allocation7], 2048  }
  0x1c   :  { %1348 = vsyncadd [#allocation7], 4294965248  ;;  %vm40_vm0 = vcmask 162816   ;;  %v1355_v0 = vmov 0.0   ;;  %vm43_vm1 = vcmask 158720   ;;  %v66_v1 = vld [vmem:[#allocation3] sm:$0xff] }
  0x1d   :  { %41 = vst.msk [vmem:[#allocation2] sm:$0xff] %vm40_vm0, %v1355_v0  ;;  %42 = vst.msk [vmem:[#allocation2 + $0x8] sm:$0xff] %vm40_vm0, %v1355_v0  ;;  %v68_v2 = vld [vmem:[#allocation3 + $0x10] sm:$0xff]  ;;  %s1356_s0 = smov 2   ;;  %v67_v3 = vld [vmem:[#allocation3 + $0x8] sm:$0xff]  ;;  %vm146_vm2 = vcmask 146448  }
  0x1e   :  { %45 = vst.msk [vmem:[#allocation2 + $0x18] sm:$0xff] %vm40_vm0, %v1355_v0  ;;  %46 = vst.msk [vmem:[#allocation2 + $0x20] sm:$0xff] %vm40_vm0, %v1355_v0  ;;  %98 = vrot.lane.b32.xlu0 %v66_v1, %s1356_s0  ;;  %102 = vrot.lane.b32.xlu1 %v68_v2, %s1356_s0  ;;  %v69_v4 = vld [vmem:[#allocation3 + $0x18] sm:$0xff]  ;;  %v70_v5 = vld [vmem:[#allocation3 + $0x20] sm:$0xff]  ;;  %s1357_s1 = smov 127   ;;  %s1358_s21 = smov 126  }
  0x1f   :  { %48 = vst.msk [vmem:[#allocation2 + $0x30] sm:$0xff] %vm40_vm0, %v1355_v0  ;;  %49 = vst.msk [vmem:[#allocation2 + $0x38] sm:$0xff] %vm40_vm0, %v1355_v0  ;;  %v71_v6 = vld [vmem:[#allocation3 + $0x28] sm:$0xff]  ;;  %v73_v7 = vld [vmem:[#allocation3 + $0x38] sm:$0xff]  ;;  %s1359_s22 = smov 125   ;;  %s1360_s23 = smov 124  }
  0x20   :  { %51 = vst.msk [vmem:[#allocation2 + $0x48] sm:$0xff] %vm40_vm0, %v1355_v0  ;;  %52 = vst.msk [vmem:[#allocation2 + $0x50] sm:$0xff] %vm40_vm0, %v1355_v0  ;;  %v72_v8 = vld [vmem:[#allocation3 + $0x30] sm:$0xff]  ;;  %v74_v9 = vld [vmem:[#allocation3 + $0x40] sm:$0xff]  ;;  %vm819_vm3 = vcmask 1046528   ;;  %vm940_vm4 = vcmask 1045504  }
  0x21   :  { %54 = vst.msk [vmem:[#allocation2 + $0x60] sm:$0xff] %vm40_vm0, %v1355_v0  ;;  %55 = vst.msk [vmem:[#allocation2 + $0x68] sm:$0xff] %vm40_vm0, %v1355_v0  ;;  %v75_v10 = vld [vmem:[#allocation3 + $0x48] sm:$0xff]  ;;  %v77_v11 = vld [vmem:[#allocation3 + $0x58] sm:$0xff]  ;;  %vm1013_vm5 = vcmask 1044480   ;;  %vm1118_vm6 = vcmask 1043456  }
  0x22   :  { %57 = vst.msk [vmem:[#allocation2 + $0x78] sm:$0xff] %vm40_vm0, %v1355_v0  ;;  %58 = vst.msk [vmem:[#allocation2 + $0x80] sm:$0xff] %vm40_vm0, %v1355_v0  ;;  %100 = vrot.lane.b32.xlu0 %v67_v3, %s1356_s0  ;;  %104 = vrot.lane.b32.xlu1 %v69_v4, %s1356_s0  ;;  %v76_v12 = vld [vmem:[#allocation3 + $0x50] sm:$0xff]  ;;  %v78_v13 = vld [vmem:[#allocation3 + $0x60] sm:$0xff]  ;;  %vm1239_vm7 = vcmask 130048   ;;  %s1361_s24 = smov [#allocation8]  }
  0x23   :  { %60 = vst.msk [vmem:[#allocation2 + $0x90] sm:$0xff] %vm40_vm0, %v1355_v0  ;;  %61 = vst.msk [vmem:[#allocation2 + $0x98] sm:$0xff] %vm40_vm0, %v1355_v0  ;;  %v79_v14 = vld [vmem:[#allocation3 + $0x68] sm:$0xff]  ;;  %v81_v15 = vld [vmem:[#allocation3 + $0x78] sm:$0xff]  ;;  %s1261_s25 = sshll.u32 %s1361_s24, 4  ;;  %s1262_s25 = int_to_ptr.vmem [resolvable:$true] %s1261_s25 }
  0x24   :  { %63 = vst.msk [vmem:[#allocation2 + $0xa8] sm:$0xff] %vm40_vm0, %v1355_v0  ;;  %64 = vst.msk [vmem:[#allocation2 + $0xb0] sm:$0xff] %vm40_vm0, %v1355_v0  ;;  %v80_v16 = vld [vmem:[#allocation3 + $0x70] sm:$0xff]  ;;  %s1325_s26 = scalar_lea.vmem %s1262_s25, 2048  ;;  %p1330_p11 = scmp.lt.s32.totalorder %s1262_s25, %s1262_s25 }
  0x25   :  { %44 = vst.msk [vmem:[#allocation2 + $0x10] sm:$0xf] %vm43_vm1, %v1355_v0  ;;  %47 = vst.msk [vmem:[#allocation2 + $0x28] sm:$0xf] %vm43_vm1, %v1355_v0  ;;  %p1326_p10 = scmp.ne.s32.totalorder %s1262_s25, %s1325_s26  ;;  %p1331_p12 = scmp.lt.s32.totalorder %s1325_s26, %s1325_s26 }
  0x26   :  { %50 = vst.msk [vmem:[#allocation2 + $0x40] sm:$0xf] %vm43_vm1, %v1355_v0  ;;  %53 = vst.msk [vmem:[#allocation2 + $0x58] sm:$0xf] %vm43_vm1, %v1355_v0  ;;  %106 = vrot.lane.b32.xlu0 %v70_v5, %s1356_s0  ;;  %108 = vrot.lane.b32.xlu1 %v71_v6, %s1356_s0 }
  0x27   :  { %56 = vst.msk [vmem:[#allocation2 + $0x70] sm:$0xf] %vm43_vm1, %v1355_v0  ;;  %59 = vst.msk [vmem:[#allocation2 + $0x88] sm:$0xf] %vm43_vm1, %v1355_v0  ;;  %p1332_p13 = por %p1331_p12, %p1330_p11 }
  0x28   :  { %62 = vst.msk [vmem:[#allocation2 + $0xa0] sm:$0xf] %vm43_vm1, %v1355_v0  ;;  %65 = vst.msk [vmem:[#allocation2 + $0xb8] sm:$0xf] %vm43_vm1, %v1355_v0 }
  0x29   :  { %p1333_p0 = pnand %p1332_p13, %p1326_p10 }
  0x2a   :  { %112 = vrot.lane.b32.xlu1 %v73_v7, %s1356_s0  ;;  %110 = vrot.lane.b32.xlu0 %v72_v8, %s1356_s0 }
  0x2e   :  { %114 = vrot.lane.b32.xlu0 %v74_v9, %s1356_s0  ;;  %116 = vrot.lane.b32.xlu1 %v75_v10, %s1356_s0 }
  0x32   :  { %120 = vrot.lane.b32.xlu1 %v77_v11, %s1356_s0  ;;  %118 = vrot.lane.b32.xlu0 %v76_v12, %s1356_s0 }
  0x36   :  { %122 = vrot.lane.b32.xlu0 %v78_v13, %s1356_s0  ;;  %124 = vrot.lane.b32.xlu1 %v79_v14, %s1356_s0 }
  0x3a   :  { %128 = vrot.lane.b32.xlu1 %v81_v15, %s1356_s0  ;;  %126 = vrot.lane.b32.xlu0 %v80_v16, %s1356_s0 }
  0x90   :  { %v99_v17 = vpop.permute.xlu0 %98  ;;  %v103_v18 = vpop.permute.xlu1 %102 }
  0x91   :  { %147 = vst.msk [vmem:[#allocation2 + $0x2] sm:$0xff] %vm146_vm2, %v99_v17  ;;  %149 = vst.msk [vmem:[#allocation2 + $0x1a] sm:$0xff] %vm146_vm2, %v103_v18 }
  0x94   :  { %v101_v19 = vpop.permute.xlu0 %100  ;;  %v105_v20 = vpop.permute.xlu1 %104 }
  0x95   :  { %148 = vst.msk [vmem:[#allocation2 + $0xa] sm:$0xff] %vm146_vm2, %v101_v19  ;;  %150 = vst.msk [vmem:[#allocation2 + $0x22] sm:$0xff] %vm146_vm2, %v105_v20 }
  0x98   :  { %v1409_v21 = vld [vmem:[#allocation2] sm:$0xff]  ;;  %v107_v22 = vpop.permute.xlu0 %106  ;;  %v109_v23 = vpop.permute.xlu1 %108  ;;  %v1418_v25 = vld [vmem:[#allocation2 + $0x18] sm:$0xff] }
  0x99   :  { %v1412_v24 = vmul.f32 0.24420135, %v1409_v21  ;;  %151 = vst.msk [vmem:[#allocation2 + $0x32] sm:$0xff] %vm146_vm2, %v107_v22  ;;  %152 = vst.msk [vmem:[#allocation2 + $0x3a] sm:$0xff] %vm146_vm2, %v109_v23  ;;  %v1439_v33 = vmul.f32 0.24420135, %v1418_v25 }
  0x9a   :  { %v379_v17 = vmul.f32 0.40261996, %v1409_v21  ;;  %v382_v20 = vmul.f32 0.40261996, %v1418_v25 }
  0x9b   :  { %283 = vrot.lane.b32.xlu0 %v1412_v24, %s1357_s1 }
  0x9c   :  { %v1420_v26 = vld [vmem:[#allocation2 + $0x8] sm:$0xff]  ;;  %v1422_v27 = vld [vmem:[#allocation2 + $0x10] sm:$0xf]  ;;  %v1424_v28 = vld [vmem:[#allocation2 + $0x20] sm:$0xff]  ;;  %v113_v29 = vpop.permute.xlu1 %112  ;;  %v111_v30 = vpop.permute.xlu0 %110 }
  0x9d   :  { %v1427_v31 = vmul.f32 0.24420135, %v1420_v26  ;;  %v1430_v32 = vmul.f32 0.24420135, %v1422_v27  ;;  %154 = vst.msk [vmem:[#allocation2 + $0x52] sm:$0xff] %vm146_vm2, %v113_v29  ;;  %153 = vst.msk [vmem:[#allocation2 + $0x4a] sm:$0xff] %vm146_vm2, %v111_v30 }
  0x9e   :  { %v1442_v34 = vmul.f32 0.24420135, %v1424_v28  ;;  %v1444_v35 = vld [vmem:[#allocation2 + $0x28] sm:$0xf]  ;;  %v380_v18 = vmul.f32 0.40261996, %v1420_v26 }
  0x9f   :  { %285 = vrot.lane.b32.xlu1 %v1427_v31, %s1357_s1  ;;  %287 = vrot.lane.b32.xlu0 %v1430_v32, %s1357_s1  ;;  %v1455_v39 = vmul.f32 0.24420135, %v1444_v35  ;;  %v381_v19 = vmul.f32 0.40261996, %v1422_v27  ;;  %v383_v22 = vmul.f32 0.40261996, %v1424_v28 }
  0xa0   :  { %v1446_v36 = vld [vmem:[#allocation2 + $0x30] sm:$0xff]  ;;  %v115_v37 = vpop.permute.xlu0 %114  ;;  %v117_v38 = vpop.permute.xlu1 %116  ;;  %v1460_v41 = vld [vmem:[#allocation2 + $0x38] sm:$0xff]  ;;  %v1462_v42 = vld [vmem:[#allocation2 + $0x40] sm:$0xf]  ;;  %v384_v23 = vmul.f32 0.40261996, %v1444_v35 }
  0xa1   :  { %155 = vst.msk [vmem:[#allocation2 + $0x62] sm:$0xff] %vm146_vm2, %v115_v37  ;;  %156 = vst.msk [vmem:[#allocation2 + $0x6a] sm:$0xff] %vm146_vm2, %v117_v38  ;;  %v1458_v40 = vmul.f32 0.24420135, %v1446_v36  ;;  %v1471_v45 = vmul.f32 0.24420135, %v1460_v41 }
  0xa2   :  { %v1474_v46 = vmul.f32 0.24420135, %v1462_v42  ;;  %v385_v29 = vmul.f32 0.40261996, %v1446_v36  ;;  %v386_v30 = vmul.f32 0.40261996, %v1460_v41 }
  0xa3   :  { %289 = vrot.lane.b32.xlu1 %v1439_v33, %s1357_s1  ;;  %291 = vrot.lane.b32.xlu0 %v1442_v34, %s1357_s1  ;;  %v387_v37 = vmul.f32 0.40261996, %v1462_v42 }
  0xa4   :  { %v121_v43 = vpop.permute.xlu1 %120  ;;  %v119_v44 = vpop.permute.xlu0 %118  ;;  %v1476_v47 = vld [vmem:[#allocation2 + $0x48] sm:$0xff]  ;;  %v1478_v48 = vld [vmem:[#allocation2 + $0x50] sm:$0xff]  ;;  %v1492_v53 = vld [vmem:[#allocation2 + $0x58] sm:$0xf] }
  0xa5   :  { %158 = vst.msk [vmem:[#allocation2 + $0x82] sm:$0xff] %vm146_vm2, %v121_v43  ;;  %157 = vst.msk [vmem:[#allocation2 + $0x7a] sm:$0xff] %vm146_vm2, %v119_v44  ;;  %v1487_v51 = vmul.f32 0.24420135, %v1476_v47  ;;  %v1490_v52 = vmul.f32 0.24420135, %v1478_v48 }
  0xa6   :  { %v1503_v57 = vmul.f32 0.24420135, %v1492_v53  ;;  %v388_v38 = vmul.f32 0.40261996, %v1476_v47  ;;  %v389_v43 = vmul.f32 0.40261996, %v1478_v48 }
  0xa7   :  { %293 = vrot.lane.b32.xlu1 %v1455_v39, %s1357_s1  ;;  %295 = vrot.lane.b32.xlu0 %v1458_v40, %s1357_s1  ;;  %v390_v44 = vmul.f32 0.40261996, %v1492_v53 }
  0xa8   :  { %v123_v49 = vpop.permute.xlu0 %122  ;;  %v125_v50 = vpop.permute.xlu1 %124  ;;  %v1494_v54 = vld [vmem:[#allocation2 + $0x60] sm:$0xff]  ;;  %v1508_v59 = vld [vmem:[#allocation2 + $0x68] sm:$0xff]  ;;  %v1510_v60 = vld [vmem:[#allocation2 + $0x70] sm:$0xf] }
  0xa9   :  { %159 = vst.msk [vmem:[#allocation2 + $0x92] sm:$0xff] %vm146_vm2, %v123_v49  ;;  %160 = vst.msk [vmem:[#allocation2 + $0x9a] sm:$0xff] %vm146_vm2, %v125_v50  ;;  %v1506_v58 = vmul.f32 0.24420135, %v1494_v54  ;;  %v1517_v61 = vmul.f32 0.24420135, %v1508_v59 }
  0xaa   :  { %v1520_v62 = vmul.f32 0.24420135, %v1510_v60  ;;  %v391_v49 = vmul.f32 0.40261996, %v1494_v54  ;;  %v392_v50 = vmul.f32 0.40261996, %v1508_v59 }
  0xab   :  { %297 = vrot.lane.b32.xlu1 %v1471_v45, %s1357_s1  ;;  %299 = vrot.lane.b32.xlu0 %v1474_v46, %s1357_s1 }
  0xac   :  { %v129_v55 = vpop.permute.xlu1 %128  ;;  %v127_v56 = vpop.permute.xlu0 %126  ;;  %v1522_v63 = vld [vmem:[#allocation2 + $0x78] sm:$0xff]  ;;  %v1524_v0 = vld [vmem:[#allocation2 + $0x80] sm:$0xff]  ;;  %v1536_v3 = vld [vmem:[#allocation2 + $0x88] sm:$0xf] }
  0xad   :  { %162 = vst.msk [vmem:[#allocation2 + $0xb2] sm:$0xff] %vm146_vm2, %v129_v55  ;;  %161 = vst.msk [vmem:[#allocation2 + $0xaa] sm:$0xff] %vm146_vm2, %v127_v56  ;;  %v1531_v1 = vmul.f32 0.24420135, %v1522_v63  ;;  %v1534_v2 = vmul.f32 0.24420135, %v1524_v0 }
  0xae   :  { %v1545_v5 = vmul.f32 0.24420135, %v1536_v3  ;;  %v393_v55 = vmul.f32 0.40261996, %v1510_v60  ;;  %v394_v56 = vmul.f32 0.40261996, %v1522_v63 }
  0xaf   :  { %301 = vrot.lane.b32.xlu1 %v1487_v51, %s1357_s1  ;;  %303 = vrot.lane.b32.xlu0 %v1490_v52, %s1357_s1 }
  0xb0   :  { %v1538_v4 = vld [vmem:[#allocation2 + $0x90] sm:$0xff]  ;;  %v1550_v7 = vld [vmem:[#allocation2 + $0x98] sm:$0xff]  ;;  %v1552_v8 = vld [vmem:[#allocation2 + $0xa0] sm:$0xf] }
  0xb1   :  { %v1548_v6 = vmul.f32 0.24420135, %v1538_v4  ;;  %v1559_v9 = vmul.f32 0.24420135, %v1550_v7  ;;  %v1562_v10 = vmul.f32 0.24420135, %v1552_v8 }
  0xb3   :  { %305 = vrot.lane.b32.xlu1 %v1503_v57, %s1357_s1  ;;  %307 = vrot.lane.b32.xlu0 %v1506_v58, %s1357_s1 }
  0xb4   :  { %v1564_v11 = vld [vmem:[#allocation2 + $0xa8] sm:$0xff]  ;;  %v1566_v12 = vld [vmem:[#allocation2 + $0xb0] sm:$0xff]  ;;  %v1578_v15 = vld [vmem:[#allocation2 + $0xb8] sm:$0xf] }
  0xb5   :  { %v1573_v13 = vmul.f32 0.24420135, %v1564_v11  ;;  %v1576_v14 = vmul.f32 0.24420135, %v1566_v12  ;;  %v1585_v16 = vmul.f32 0.24420135, %v1578_v15 }
  0xb7   :  { %309 = vrot.lane.b32.xlu1 %v1517_v61, %s1357_s1  ;;  %311 = vrot.lane.b32.xlu0 %v1520_v62, %s1357_s1 }
  0xbb   :  { %313 = vrot.lane.b32.xlu1 %v1531_v1, %s1357_s1  ;;  %315 = vrot.lane.b32.xlu0 %v1534_v2, %s1357_s1 }
  0xbf   :  { %317 = vrot.lane.b32.xlu1 %v1545_v5, %s1357_s1  ;;  %319 = vrot.lane.b32.xlu0 %v1548_v6, %s1357_s1 }
  0xc3   :  { %321 = vrot.lane.b32.xlu1 %v1559_v9, %s1357_s1  ;;  %323 = vrot.lane.b32.xlu0 %v1562_v10, %s1357_s1 }
  0xc7   :  { %325 = vrot.lane.b32.xlu1 %v1573_v13, %s1357_s1  ;;  %327 = vrot.lane.b32.xlu0 %v1576_v14, %s1357_s1 }
  0xcb   :  { %329 = vrot.lane.b32.xlu1 %v1585_v16, %s1357_s1  ;;  %427 = vrot.lane.b32.xlu0 %v379_v17, %s1358_s21  ;;  %v395_v17 = vmul.f32 0.40261996, %v1524_v0 }
  0xcf   :  { %429 = vrot.lane.b32.xlu1 %v380_v18, %s1358_s21  ;;  %431 = vrot.lane.b32.xlu0 %v381_v19, %s1358_s21  ;;  %v396_v18 = vmul.f32 0.40261996, %v1536_v3  ;;  %v397_v19 = vmul.f32 0.40261996, %v1538_v4 }
  0xd3   :  { %433 = vrot.lane.b32.xlu1 %v382_v20, %s1358_s21  ;;  %435 = vrot.lane.b32.xlu0 %v383_v22, %s1358_s21  ;;  %v398_v20 = vmul.f32 0.40261996, %v1550_v7  ;;  %v399_v22 = vmul.f32 0.40261996, %v1552_v8 }
  0xd7   :  { %437 = vrot.lane.b32.xlu1 %v384_v23, %s1358_s21  ;;  %439 = vrot.lane.b32.xlu0 %v385_v29, %s1358_s21  ;;  %v400_v23 = vmul.f32 0.40261996, %v1564_v11  ;;  %v401_v29 = vmul.f32 0.40261996, %v1566_v12 }
  0xdb   :  { %441 = vrot.lane.b32.xlu1 %v386_v30, %s1358_s21  ;;  %443 = vrot.lane.b32.xlu0 %v387_v37, %s1358_s21  ;;  %v402_v30 = vmul.f32 0.40261996, %v1578_v15 }
  0xdf   :  { %445 = vrot.lane.b32.xlu1 %v388_v38, %s1358_s21  ;;  %447 = vrot.lane.b32.xlu0 %v389_v43, %s1358_s21 }
  0xe3   :  { %449 = vrot.lane.b32.xlu1 %v390_v44, %s1358_s21  ;;  %451 = vrot.lane.b32.xlu0 %v391_v49, %s1358_s21 }
  0xe7   :  { %453 = vrot.lane.b32.xlu1 %v392_v50, %s1358_s21  ;;  %455 = vrot.lane.b32.xlu0 %v393_v55, %s1358_s21 }
  0xeb   :  { %457 = vrot.lane.b32.xlu1 %v394_v56, %s1358_s21  ;;  %459 = vrot.lane.b32.xlu0 %v395_v17, %s1358_s21 }
  0xef   :  { %461 = vrot.lane.b32.xlu1 %v396_v18, %s1358_s21  ;;  %463 = vrot.lane.b32.xlu0 %v397_v19, %s1358_s21 }
  0xf3   :  { %465 = vrot.lane.b32.xlu1 %v398_v20, %s1358_s21  ;;  %467 = vrot.lane.b32.xlu0 %v399_v22, %s1358_s21 }
  0xf7   :  { %469 = vrot.lane.b32.xlu1 %v400_v23, %s1358_s21  ;;  %471 = vrot.lane.b32.xlu0 %v401_v29, %s1358_s21  ;;  %v205_v23 = vmul.f32 0.054488685, %v1538_v4 }
  0xfb   :  { %473 = vrot.lane.b32.xlu1 %v402_v30, %s1358_s21  ;;  %523 = vrot.lane.b32.xlu0 %v1412_v24, %s1359_s22  ;;  %v187_v24 = vmul.f32 0.054488685, %v1409_v21 }
  0xff   :  { %525 = vrot.lane.b32.xlu1 %v1427_v31, %s1359_s22  ;;  %527 = vrot.lane.b32.xlu0 %v1430_v32, %s1359_s22 }
 0x103   :  { %529 = vrot.lane.b32.xlu1 %v1439_v33, %s1359_s22  ;;  %531 = vrot.lane.b32.xlu0 %v1442_v34, %s1359_s22  ;;  %v1663_v33 = vmul.f32 0.054488685, %v1420_v26  ;;  %v189_v34 = vmul.f32 0.054488685, %v1422_v27  ;;  %v191_v26 = vmul.f32 0.054488685, %v1424_v28 }
 0x107   :  { %533 = vrot.lane.b32.xlu1 %v1455_v39, %s1359_s22  ;;  %535 = vrot.lane.b32.xlu0 %v1458_v40, %s1359_s22 }
 0x10b   :  { %537 = vrot.lane.b32.xlu1 %v1471_v45, %s1359_s22  ;;  %539 = vrot.lane.b32.xlu0 %v1474_v46, %s1359_s22  ;;  %v1676_v46 = vmul.f32 0.054488685, %v1418_v25  ;;  %v193_v25 = vmul.f32 0.054488685, %v1446_v36 }
 0x10d   :  { %v284_v31 = vpop.permute.xlu0 %283 }
 0x10e   :  { %v1656_v32 = vadd.f32 %v284_v31, %v187_v24  ;;  %v207_v31 = vmul.f32 0.054488685, %v1552_v8 }
 0x10f   :  { %541 = vrot.lane.b32.xlu1 %v1487_v51, %s1359_s22  ;;  %543 = vrot.lane.b32.xlu0 %v1490_v52, %s1359_s22 }
 0x111   :  { %v286_v39 = vpop.permute.xlu1 %285  ;;  %v288_v40 = vpop.permute.xlu0 %287 }
 0x112   :  { %v1667_v45 = vadd.f32 %v286_v39, %v1663_v33  ;;  %v1669_v21 = vadd.f32 %v288_v40, %v189_v34  ;;  %v208_v39 = vmul.f32 0.054488685, %v1564_v11  ;;  %v209_v40 = vmul.f32 0.054488685, %v1566_v12 }
 0x113   :  { %545 = vrot.lane.b32.xlu1 %v1503_v57, %s1359_s22  ;;  %547 = vrot.lane.b32.xlu0 %v1506_v58, %s1359_s22  ;;  %v1689_v57 = vmul.f32 0.054488685, %v1444_v35  ;;  %v195_v35 = vmul.f32 0.054488685, %v1462_v42 }
 0x115   :  { %v290_v51 = vpop.permute.xlu1 %289  ;;  %v292_v27 = vpop.permute.xlu0 %291 }
 0x116   :  { %v1680_v52 = vadd.f32 %v290_v51, %v1676_v46  ;;  %v1682_v37 = vadd.f32 %v292_v27, %v191_v26  ;;  %v210_v51 = vmul.f32 0.054488685, %v1578_v15 }
 0x117   :  { %549 = vrot.lane.b32.xlu1 %v1517_v61, %s1359_s22  ;;  %551 = vrot.lane.b32.xlu0 %v1520_v62, %s1359_s22  ;;  %v1702_v61 = vmul.f32 0.054488685, %v1460_v41  ;;  %v197_v41 = vmul.f32 0.054488685, %v1478_v48 }
 0x119   :  { %v294_v58 = vpop.permute.xlu1 %293  ;;  %v296_v28 = vpop.permute.xlu0 %295 }
 0x11a   :  { %v1693_v38 = vadd.f32 %v294_v58, %v1689_v57  ;;  %v1695_v43 = vadd.f32 %v296_v28, %v193_v25 }
 0x11b   :  { %553 = vrot.lane.b32.xlu1 %v1531_v1, %s1359_s22  ;;  %555 = vrot.lane.b32.xlu0 %v1534_v2, %s1359_s22  ;;  %v196_v1 = vmul.f32 0.054488685, %v1476_v47 }
 0x11d   :  { %v298_v62 = vpop.permute.xlu1 %297  ;;  %v300_v36 = vpop.permute.xlu0 %299 }
 0x11e   :  { %v1706_v44 = vadd.f32 %v298_v62, %v1702_v61  ;;  %v1708_v49 = vadd.f32 %v300_v36, %v195_v35 }
 0x11f   :  { %557 = vrot.lane.b32.xlu1 %v1545_v5, %s1359_s22  ;;  %559 = vrot.lane.b32.xlu0 %v1548_v6, %s1359_s22  ;;  %v198_v5 = vmul.f32 0.054488685, %v1492_v53  ;;  %v199_v6 = vmul.f32 0.054488685, %v1494_v54 }
 0x121   :  { %v302_v2 = vpop.permute.xlu1 %301  ;;  %v304_v50 = vpop.permute.xlu0 %303 }
 0x122   :  { %v1716_v42 = vadd.f32 %v302_v2, %v196_v1  ;;  %v1718_v55 = vadd.f32 %v304_v50, %v197_v41 }
 0x123   :  { %561 = vrot.lane.b32.xlu1 %v1559_v9, %s1359_s22  ;;  %563 = vrot.lane.b32.xlu0 %v1562_v10, %s1359_s22  ;;  %v200_v9 = vmul.f32 0.054488685, %v1508_v59  ;;  %v201_v10 = vmul.f32 0.054488685, %v1510_v60 }
 0x125   :  { %v306_v56 = vpop.permute.xlu1 %305  ;;  %v308_v47 = vpop.permute.xlu0 %307 }
 0x126   :  { %v1726_v17 = vadd.f32 %v306_v56, %v198_v5  ;;  %v1728_v48 = vadd.f32 %v308_v47, %v199_v6 }
 0x127   :  { %565 = vrot.lane.b32.xlu1 %v1573_v13, %s1359_s22  ;;  %567 = vrot.lane.b32.xlu0 %v1576_v14, %s1359_s22  ;;  %v202_v13 = vmul.f32 0.054488685, %v1522_v63  ;;  %v203_v14 = vmul.f32 0.054488685, %v1524_v0 }
 0x129   :  { %v310_v18 = vpop.permute.xlu1 %309  ;;  %v312_v53 = vpop.permute.xlu0 %311 }
 0x12a   :  { %v1736_v19 = vadd.f32 %v310_v18, %v200_v9  ;;  %v1738_v54 = vadd.f32 %v312_v53, %v201_v10 }
 0x12b   :  { %569 = vrot.lane.b32.xlu1 %v1585_v16, %s1359_s22  ;;  %643 = vrot.lane.b32.xlu0 %v187_v24, %s1360_s23  ;;  %v204_v16 = vmul.f32 0.054488685, %v1536_v3  ;;  %v206_v24 = vmul.f32 0.054488685, %v1550_v7 }
 0x12d   :  { %v314_v20 = vpop.permute.xlu1 %313  ;;  %v316_v59 = vpop.permute.xlu0 %315 }
 0x12e   :  { %v1745_v22 = vadd.f32 %v314_v20, %v202_v13  ;;  %v1747_v60 = vadd.f32 %v316_v59, %v203_v14 }
 0x12f   :  { %645 = vrot.lane.b32.xlu1 %v1663_v33, %s1360_s23  ;;  %647 = vrot.lane.b32.xlu0 %v189_v34, %s1360_s23 }
 0x131   :  { %v318_v29 = vpop.permute.xlu1 %317  ;;  %v320_v30 = vpop.permute.xlu0 %319 }
 0x132   :  { %v1754_v63 = vadd.f32 %v318_v29, %v204_v16  ;;  %v1756_v0 = vadd.f32 %v320_v30, %v205_v23 }
 0x133   :  { %649 = vrot.lane.b32.xlu1 %v1676_v46, %s1360_s23  ;;  %651 = vrot.lane.b32.xlu0 %v191_v26, %s1360_s23 }
 0x135   :  { %v322_v33 = vpop.permute.xlu1 %321  ;;  %v324_v34 = vpop.permute.xlu0 %323 }
 0x136   :  { %v1763_v3 = vadd.f32 %v322_v33, %v206_v24  ;;  %v1765_v4 = vadd.f32 %v324_v34, %v207_v31 }
 0x137   :  { %653 = vrot.lane.b32.xlu1 %v1689_v57, %s1360_s23  ;;  %655 = vrot.lane.b32.xlu0 %v193_v25, %s1360_s23 }
 0x139   :  { %v326_v46 = vpop.permute.xlu1 %325  ;;  %v328_v26 = vpop.permute.xlu0 %327 }
 0x13a   :  { %v1772_v7 = vadd.f32 %v326_v46, %v208_v39  ;;  %v1774_v8 = vadd.f32 %v328_v26, %v209_v40 }
 0x13b   :  { %657 = vrot.lane.b32.xlu1 %v1702_v61, %s1360_s23  ;;  %659 = vrot.lane.b32.xlu0 %v195_v35, %s1360_s23 }
 0x13d   :  { %v330_v27 = vpop.permute.xlu1 %329  ;;  %v428_v57 = vpop.permute.xlu0 %427 }
 0x13e   :  { %v1780_v25 = vadd.f32 %v330_v27, %v210_v51  ;;  %v1783_v11 = vadd.f32 %v428_v57, %v1656_v32 }
 0x13f   :  { %661 = vrot.lane.b32.xlu1 %v196_v1, %s1360_s23  ;;  %663 = vrot.lane.b32.xlu0 %v197_v41, %s1360_s23 }
 0x141   :  { %v430_v12 = vpop.permute.xlu1 %429  ;;  %v432_v58 = vpop.permute.xlu0 %431 }
 0x142   :  { %v1788_v28 = vadd.f32 %v430_v12, %v1667_v45  ;;  %v1791_v61 = vadd.f32 %v432_v58, %v1669_v21 }
 0x143   :  { %665 = vrot.lane.b32.xlu1 %v198_v5, %s1360_s23  ;;  %667 = vrot.lane.b32.xlu0 %v199_v6, %s1360_s23 }
 0x145   :  { %v434_v15 = vpop.permute.xlu1 %433  ;;  %v436_v35 = vpop.permute.xlu0 %435 }
 0x146   :  { %v1796_v32 = vadd.f32 %v434_v15, %v1680_v52  ;;  %v1799_v62 = vadd.f32 %v436_v35, %v1682_v37 }
 0x147   :  { %669 = vrot.lane.b32.xlu1 %v200_v9, %s1360_s23  ;;  %671 = vrot.lane.b32.xlu0 %v201_v10, %s1360_s23 }
 0x149   :  { %v438_v45 = vpop.permute.xlu1 %437  ;;  %v440_v36 = vpop.permute.xlu0 %439 }
 0x14a   :  { %v1804_v21 = vadd.f32 %v438_v45, %v1693_v38  ;;  %v1807_v1 = vadd.f32 %v440_v36, %v1695_v43 }
 0x14b   :  { %673 = vrot.lane.b32.xlu1 %v202_v13, %s1360_s23  ;;  %675 = vrot.lane.b32.xlu0 %v203_v14, %s1360_s23 }
 0x14d   :  { %v442_v52 = vpop.permute.xlu1 %441  ;;  %v444_v41 = vpop.permute.xlu0 %443 }
 0x14e   :  { %v1812_v37 = vadd.f32 %v442_v52, %v1706_v44  ;;  %v1815_v2 = vadd.f32 %v444_v41, %v1708_v49 }
 0x14f   :  { %677 = vrot.lane.b32.xlu1 %v204_v16, %s1360_s23  ;;  %679 = vrot.lane.b32.xlu0 %v205_v23, %s1360_s23 }
 0x151   :  { %v446_v38 = vpop.permute.xlu1 %445  ;;  %v448_v50 = vpop.permute.xlu0 %447 }
 0x152   :  { %v1820_v43 = vadd.f32 %v446_v38, %v1716_v42  ;;  %v1823_v5 = vadd.f32 %v448_v50, %v1718_v55 }
 0x153   :  { %681 = vrot.lane.b32.xlu1 %v206_v24, %s1360_s23  ;;  %683 = vrot.lane.b32.xlu0 %v207_v31, %s1360_s23 }
 0x155   :  { %v450_v44 = vpop.permute.xlu1 %449  ;;  %v452_v6 = vpop.permute.xlu0 %451 }
 0x156   :  { %v1828_v49 = vadd.f32 %v450_v44, %v1726_v17  ;;  %v511_v56 = vadd.f32 %v452_v6, %v1728_v48  ;;  %v1191_v6 = vld [vmem:[#allocation6] sm:$0xff] }
 0x157   :  { %685 = vrot.lane.b32.xlu1 %v208_v39, %s1360_s23  ;;  %687 = vrot.lane.b32.xlu0 %v209_v40, %s1360_s23 }
 0x159   :  { %v454_v42 = vpop.permute.xlu1 %453  ;;  %v456_v47 = vpop.permute.xlu0 %455 }
 0x15a   :  { %v1834_v55 = vadd.f32 %v454_v42, %v1736_v19  ;;  %v1837_v9 = vadd.f32 %v456_v47, %v1738_v54  ;;  %v1193_v42 = vld [vmem:[#allocation6 + $0x10] sm:$0xff] }
 0x15b   :  { %689 = vrot.lane.b32.xlu1 %v210_v51, %s1360_s23 }
 0x15d   :  { %v458_v10 = vpop.permute.xlu1 %457  ;;  %v460_v18 = vpop.permute.xlu0 %459 }
 0x15e   :  { %v514_v17 = vadd.f32 %v458_v10, %v1745_v22  ;;  %v515_v48 = vadd.f32 %v460_v18, %v1747_v60  ;;  %v1194_v18 = vld [vmem:[#allocation6 + $0x18] sm:$0xff] }
 0x161   :  { %v462_v53 = vpop.permute.xlu1 %461  ;;  %v464_v13 = vpop.permute.xlu0 %463 }
 0x162   :  { %v516_v14 = vadd.f32 %v462_v53, %v1754_v63  ;;  %v517_v20 = vadd.f32 %v464_v13, %v1756_v0  ;;  %v1891_v53 = vmul.f32 0.1, %v1191_v6  ;;  %v1195_v13 = vld [vmem:[#allocation6 + $0x20] sm:$0xff] }
 0x165   :  { %v466_v59 = vpop.permute.xlu1 %465  ;;  %v468_v19 = vpop.permute.xlu0 %467 }
 0x166   :  { %v518_v16 = vadd.f32 %v466_v59, %v1763_v3  ;;  %v519_v54 = vadd.f32 %v468_v19, %v1765_v4  ;;  %v1895_v19 = vmul.f32 0.1, %v1193_v42 }
 0x169   :  { %v470_v23 = vpop.permute.xlu1 %469  ;;  %v472_v29 = vpop.permute.xlu0 %471 }
 0x16a   :  { %v520_v30 = vadd.f32 %v470_v23, %v1772_v7  ;;  %v521_v22 = vadd.f32 %v472_v29, %v1774_v8  ;;  %v1898_v29 = vmul.f32 0.1, %v1194_v18 }
 0x16d   :  { %v474_v24 = vpop.permute.xlu1 %473  ;;  %v524_v60 = vpop.permute.xlu0 %523 }
 0x16e   :  { %v522_v31 = vadd.f32 %v474_v24, %v1780_v25  ;;  %v595_v23 = vadd.f32 %v524_v60, %v1783_v11  ;;  %v1200_v24 = vld [vmem:[#allocation6 + $0x48] sm:$0xff] }
 0x171   :  { %v526_v33 = vpop.permute.xlu1 %525  ;;  %v1849_v63 = vpop.permute.xlu0 %527 }
 0x172   :  { %v596_v6 = vadd.f32 %v526_v33, %v1788_v28 }
 0x175   :  { %v1851_v0 = vpop.permute.xlu1 %529  ;;  %v1853_v34 = vpop.permute.xlu0 %531 }
 0x179   :  { %v1855_v3 = vpop.permute.xlu1 %533  ;;  %v1857_v4 = vpop.permute.xlu0 %535 }
 0x17a   :  { %v600_v28 = vadd.f32 %v1855_v3, %v1804_v21  ;;  %v1929_v33 = vadd.f32 %v1857_v4, %v1807_v1 }
 0x17d   :  { %v1859_v39 = vpop.permute.xlu1 %537  ;;  %v1861_v40 = vpop.permute.xlu0 %539 }
 0x181   :  { %v1863_v46 = vpop.permute.xlu1 %541  ;;  %v1865_v26 = vpop.permute.xlu0 %543 }
 0x185   :  { %v1867_v7 = vpop.permute.xlu1 %545  ;;  %v548_v8 = vpop.permute.xlu0 %547 }
 0x186   :  { %v1869_v51 = vadd.f32 %v548_v8, %v511_v56  ;;  %v1192_v56 = vld [vmem:[#allocation6 + $0x8] sm:$0xff]  ;;  %v1202_v8 = vld [vmem:[#allocation6 + $0x58] sm:$0xff]  ;;  %v1949_v21 = vadd.f32 %v1867_v7, %v1828_v49 }
 0x187   :  { %v1893_v59 = vmul.f32 0.1, %v1192_v56  ;;  %v1913_v56 = vmul.f32 0.1, %v1200_v24 }
 0x189   :  { %v1871_v27 = vpop.permute.xlu1 %549  ;;  %v1873_v57 = vpop.permute.xlu0 %551 }
 0x18a   :  { %v1953_v1 = vadd.f32 %v1871_v27, %v1834_v55 }
 0x18d   :  { %v554_v25 = vpop.permute.xlu1 %553  ;;  %v556_v12 = vpop.permute.xlu0 %555 }
 0x18e   :  { %v1875_v58 = vadd.f32 %v554_v25, %v514_v17  ;;  %v1877_v15 = vadd.f32 %v556_v12, %v515_v48  ;;  %v1900_v12 = vmul.f32 0.1, %v1195_v13 }
 0x191   :  { %v558_v35 = vpop.permute.xlu1 %557  ;;  %v560_v45 = vpop.permute.xlu0 %559 }
 0x192   :  { %v1879_v36 = vadd.f32 %v558_v35, %v516_v14  ;;  %v1881_v52 = vadd.f32 %v560_v45, %v517_v20  ;;  %v1196_v14 = vld [vmem:[#allocation6 + $0x28] sm:$0xff]  ;;  %v1197_v20 = vld [vmem:[#allocation6 + $0x30] sm:$0xff] }
 0x193   :  { %v1902_v35 = vmul.f32 0.1, %v1196_v14  ;;  %v1904_v45 = vmul.f32 0.1, %v1197_v20  ;;  %v598_v14 = vadd.f32 %v1851_v0, %v1796_v32  ;;  %v599_v20 = vadd.f32 %v1853_v34, %v1799_v62 }
 0x194   :  { %v1941_v32 = vadd.f32 %v1863_v46, %v1820_v43  ;;  %v1945_v62 = vadd.f32 %v1865_v26, %v1823_v5  ;;  %v1957_v43 = vadd.f32 %v1873_v57, %v1837_v9 }
 0x195   :  { %v562_v41 = vpop.permute.xlu1 %561  ;;  %v564_v38 = vpop.permute.xlu0 %563 }
 0x196   :  { %v1883_v50 = vadd.f32 %v562_v41, %v518_v16  ;;  %v1885_v44 = vadd.f32 %v564_v38, %v519_v54  ;;  %v1198_v16 = vld [vmem:[#allocation6 + $0x38] sm:$0xff]  ;;  %v1199_v54 = vld [vmem:[#allocation6 + $0x40] sm:$0xff] }
 0x197   :  { %v1908_v11 = vmul.f32 0.1, %v1198_v16  ;;  %v1910_v60 = vmul.f32 0.1, %v1199_v54 }
 0x199   :  { %v566_v47 = vpop.permute.xlu1 %565  ;;  %v568_v10 = vpop.permute.xlu0 %567 }
 0x19a   :  { %v1887_v17 = vadd.f32 %v566_v47, %v520_v30  ;;  %v1889_v48 = vadd.f32 %v568_v10, %v521_v22  ;;  %v1201_v30 = vld [vmem:[#allocation6 + $0x50] sm:$0xff]  ;;  %v1917_v47 = vmul.f32 0.1, %v1202_v8 }
 0x19b   :  { %v1915_v42 = vmul.f32 0.1, %v1201_v30 }
 0x19d   :  { %v570_v22 = vpop.permute.xlu1 %569  ;;  %v644_v25 = vpop.permute.xlu0 %643 }
 0x19e   :  { %v1906_v41 = vadd.f32 %v570_v22, %v522_v31  ;;  %v715_v38 = vadd.f32 %v644_v25, %v595_v23  ;;  %v597_v31 = vadd.f32 %v1849_v63, %v1791_v61  ;;  %v1933_v61 = vadd.f32 %v1859_v39, %v1812_v37 }
 0x19f   :  { %v1937_v63 = vadd.f32 %v1861_v40, %v1815_v2 }
 0x1a0   :  { %2078 = vst [vmem:[#allocation12_spill] sm:$0xff] %v1906_v41  ;;  %v739_v10 = vmul.f32 0.054488685, %v715_v38  ;;  %v771_v18 = vmul.f32 0.24420135, %v715_v38 }
 0x1a1   :  { %v892_v13 = vmul.f32 0.40261996, %v715_v38  ;;  %v646_v16 = vpop.permute.xlu1 %645  ;;  %v648_v54 = vpop.permute.xlu0 %647 }
 0x1a2   :  { %v716_v37 = vadd.f32 %v646_v16, %v596_v6  ;;  %v717_v0 = vadd.f32 %v648_v54, %v597_v31  ;;  %v820_v2 = vrot.slane %v771_v18, 1  ;;  %v1014_v3 = vrot.slane %v771_v18, 3 }
 0x1a3   :  { %v941_v34 = vrot.slane %v892_v13, 2  ;;  %v1119_v4 = vrot.slane %v739_v10, 4 }
 0x1a4   :  { %v740_v5 = vmul.f32 0.054488685, %v716_v37  ;;  %v772_v39 = vmul.f32 0.24420135, %v716_v37  ;;  %v893_v40 = vmul.f32 0.40261996, %v716_v37 }
 0x1a5   :  { %v650_v46 = vpop.permute.xlu1 %649  ;;  %v773_v49 = vmul.f32 0.24420135, %v717_v0  ;;  %v894_v26 = vmul.f32 0.40261996, %v717_v0  ;;  %v1086_v7 = vmul.f32 0.054488685, %v717_v0  ;;  %v652_v55 = vpop.permute.xlu0 %651 }
 0x1a6   :  { %v718_v23 = vadd.f32 %v650_v46, %v598_v14  ;;  %v821_v27 = vrot.slane %v772_v39, 1  ;;  %v942_v24 = vrot.slane %v893_v40, 2  ;;  %v1015_v30 = vrot.slane %v772_v39, 3 }
 0x1a7   :  { %v1120_v8 = vrot.slane %v740_v5, 4  ;;  %v823_v22 = vrot.slane %v773_v49, 1  ;;  %v944_v25 = vrot.slane %v894_v26, 2  ;;  %v1017_v38 = vrot.slane %v773_v49, 3 }
 0x1a8   :  { %v1122_v6 = vrot.slane %v1086_v7, 4  ;;  %v822_v9 = vsel %vm819_vm3, %v820_v2, %v821_v27  ;;  %v943_v57 = vsel %vm940_vm4, %v941_v34, %v942_v24  ;;  %v1016_v31 = vsel %vm1013_vm5, %v1014_v3, %v1015_v30 }
 0x1a9   :  { %v1121_v18 = vsel %vm1118_vm6, %v1119_v4, %v1120_v8  ;;  %v654_v13 = vpop.permute.xlu1 %653  ;;  %v876_v14 = vadd.f32 %v822_v9, %v739_v10  ;;  %v824_v16 = vsel %vm819_vm3, %v821_v27, %v823_v22  ;;  %v945_v54 = vsel %vm940_vm4, %v942_v24, %v944_v25  ;;  %v656_v3 = vpop.permute.xlu0 %655 }
 0x1aa   :  { %v1018_v37 = vsel %vm1013_vm5, %v1015_v30, %v1017_v38  ;;  %v877_v0 = vadd.f32 %v824_v16, %v740_v5  ;;  %v1123_v39 = vsel %vm1118_vm6, %v1120_v8, %v1122_v6  ;;  %v741_v40 = vmul.f32 0.054488685, %v718_v23 }
 0x1ab   :  { %v774_v46 = vmul.f32 0.24420135, %v718_v23  ;;  %v997_v2 = vadd.f32 %v943_v57, %v876_v14  ;;  %v895_v49 = vmul.f32 0.40261996, %v718_v23  ;;  %v719_v34 = vadd.f32 %v652_v55, %v599_v20 }
 0x1ac   :  { %v720_v26 = vadd.f32 %v654_v13, %v600_v28  ;;  %v998_v7 = vadd.f32 %v945_v54, %v877_v0  ;;  %v1124_v10 = vrot.slane %v741_v40, 4 }
 0x1ad   :  { %v825_v4 = vrot.slane %v774_v46, 1  ;;  %v1019_v41 = vrot.slane %v774_v46, 3  ;;  %v658_v9 = vpop.permute.xlu1 %657  ;;  %v1070_v27 = vadd.f32 %v1016_v31, %v997_v2  ;;  %v946_v22 = vrot.slane %v895_v49, 2 }
 0x1ae   :  { %v742_v24 = vmul.f32 0.054488685, %v719_v34  ;;  %v775_v25 = vmul.f32 0.24420135, %v719_v34  ;;  %v1071_v30 = vadd.f32 %v1018_v37, %v998_v7  ;;  %v896_v5 = vmul.f32 0.40261996, %v719_v34  ;;  %v660_v37 = vpop.permute.xlu0 %659 }
 0x1af   :  { %v776_v38 = vmul.f32 0.24420135, %v720_v26  ;;  %v897_v8 = vmul.f32 0.40261996, %v720_v26  ;;  %v1175_v6 = vadd.f32 %v1121_v18, %v1070_v27 }
 0x1b0   :  { %v826_v16 = vrot.slane %v775_v25, 1  ;;  %v1020_v57 = vrot.slane %v775_v25, 3  ;;  %v1125_v23 = vrot.slane %v742_v24, 4  ;;  %v1176_v20 = vadd.f32 %v1123_v39, %v1071_v30 }
 0x1b1   :  { %v947_v28 = vrot.slane %v896_v5, 2  ;;  %v828_v55 = vrot.slane %v776_v38, 1  ;;  %v949_v13 = vrot.slane %v897_v8, 2  ;;  %v1223_v14 = vadd.f32 %v1891_v53, %v1175_v6  ;;  %v662_v39 = vpop.permute.xlu1 %661 }
 0x1b2   :  { %v827_v54 = vsel %vm819_vm3, %v825_v4, %v826_v16  ;;  %v1021_v31 = vsel %vm1013_vm5, %v1019_v41, %v1020_v57  ;;  %v1126_v0 = vsel %vm1118_vm6, %v1124_v10, %v1125_v23  ;;  %v1224_v46 = vadd.f32 %v1893_v59, %v1176_v20 }
 0x1b3   :  { %v878_v2 = vadd.f32 %v827_v54, %v741_v40  ;;  %v948_v18 = vsel %vm940_vm4, %v946_v22, %v947_v28  ;;  %v829_v49 = vsel %vm819_vm3, %v826_v16, %v828_v55  ;;  %1240 = vst.msk [vmem:[#allocation8] sm:$0xff] %vm1239_vm7, %v1223_v14  ;;  %v950_v53 = vsel %vm940_vm4, %v947_v28, %v949_v13  ;;  %v664_v13 = vpop.permute.xlu0 %663 }
 0x1b4   :  { %v879_v34 = vadd.f32 %v829_v49, %v742_v24  ;;  %v1022_v7 = vrot.slane %v776_v38, 3  ;;  %v1087_v4 = vmul.f32 0.054488685, %v720_v26  ;;  %1241 = vst.msk [vmem:[#allocation8 + $0x8] sm:$0xff] %vm1239_vm7, %v1224_v46  ;;  %v721_v10 = vadd.f32 %v656_v3, %v1929_v33 }
 0x1b5   :  { %v999_v41 = vadd.f32 %v948_v18, %v878_v2  ;;  %v722_v59 = vadd.f32 %v658_v9, %v1933_v61  ;;  %v723_v40 = vadd.f32 %v660_v37, %v1937_v63  ;;  %v724_v30 = vadd.f32 %v662_v39, %v1941_v32 }
 0x1b6   :  { %v1000_v27 = vadd.f32 %v950_v53, %v879_v34  ;;  %v1023_v22 = vsel %vm1013_vm5, %v1020_v57, %v1022_v7  ;;  %v1127_v25 = vrot.slane %v1087_v4, 4  ;;  %v743_v5 = vmul.f32 0.054488685, %v721_v10 }
 0x1b7   :  { %v1072_v24 = vadd.f32 %v1021_v31, %v999_v41  ;;  %v777_v8 = vmul.f32 0.24420135, %v721_v10  ;;  %v898_v38 = vmul.f32 0.40261996, %v721_v10  ;;  %v744_v16 = vmul.f32 0.054488685, %v722_v59 }
 0x1b8   :  { %v1073_v26 = vadd.f32 %v1023_v22, %v1000_v27  ;;  %v1128_v6 = vsel %vm1118_vm6, %v1125_v23, %v1127_v25  ;;  %v778_v20 = vmul.f32 0.24420135, %v722_v59  ;;  %v1129_v28 = vrot.slane %v743_v5, 4 }
 0x1b9   :  { %v1177_v33 = vadd.f32 %v1126_v0, %v1072_v24  ;;  %v830_v3 = vrot.slane %v777_v8, 1  ;;  %v951_v61 = vrot.slane %v898_v38, 2  ;;  %v1024_v9 = vrot.slane %v777_v8, 3  ;;  %v666_v24 = vpop.permute.xlu1 %665 }
 0x1ba   :  { %v1178_v63 = vadd.f32 %v1128_v6, %v1073_v26  ;;  %v831_v55 = vrot.slane %v778_v20, 1  ;;  %v899_v57 = vmul.f32 0.40261996, %v722_v59  ;;  %v1025_v14 = vrot.slane %v778_v20, 3 }
 0x1bb   :  { %v1225_v32 = vadd.f32 %v1895_v19, %v1177_v33  ;;  %v1130_v54 = vrot.slane %v744_v16, 4  ;;  %v779_v31 = vmul.f32 0.24420135, %v723_v40  ;;  %v900_v2 = vmul.f32 0.40261996, %v723_v40 }
 0x1bc   :  { %v1226_v37 = vadd.f32 %v1898_v29, %v1178_v63  ;;  %v832_v23 = vsel %vm819_vm3, %v830_v3, %v831_v55  ;;  %v952_v46 = vrot.slane %v899_v57, 2  ;;  %v1026_v18 = vsel %vm1013_vm5, %v1024_v9, %v1025_v14 }
 0x1bd   :  { %1242 = vst.msk [vmem:[#allocation8 + $0x10] sm:$0xff] %vm1239_vm7, %v1225_v32  ;;  %v880_v0 = vadd.f32 %v832_v23, %v743_v5  ;;  %v1131_v49 = vsel %vm1118_vm6, %v1129_v28, %v1130_v54  ;;  %v833_v39 = vrot.slane %v779_v31, 1  ;;  %v954_v34 = vrot.slane %v900_v2, 2  ;;  %v668_v5 = vpop.permute.xlu0 %667 }
 0x1be   :  { %1243 = vst.msk [vmem:[#allocation8 + $0x18] sm:$0xff] %vm1239_vm7, %v1226_v37  ;;  %v953_v19 = vsel %vm940_vm4, %v951_v61, %v952_v46  ;;  %v1027_v53 = vrot.slane %v779_v31, 3  ;;  %v1088_v7 = vmul.f32 0.054488685, %v723_v40  ;;  %v745_v41 = vmul.f32 0.054488685, %v724_v30 }
 0x1bf   :  { %v1001_v29 = vadd.f32 %v953_v19, %v880_v0  ;;  %v834_v4 = vsel %vm819_vm3, %v831_v55, %v833_v39  ;;  %v780_v10 = vmul.f32 0.24420135, %v724_v30  ;;  %v955_v27 = vsel %vm940_vm4, %v952_v46, %v954_v34 }
 0x1c0   :  { %v881_v59 = vadd.f32 %v834_v4, %v744_v16  ;;  %v1028_v22 = vsel %vm1013_vm5, %v1025_v14, %v1027_v53  ;;  %v1132_v25 = vrot.slane %v1088_v7, 4  ;;  %v901_v26 = vmul.f32 0.40261996, %v724_v30 }
 0x1c1   :  { %v1074_v8 = vadd.f32 %v1026_v18, %v1001_v29  ;;  %v835_v38 = vrot.slane %v780_v10, 1  ;;  %v1029_v6 = vrot.slane %v780_v10, 3  ;;  %v1134_v33 = vrot.slane %v745_v41, 4 }
 0x1c2   :  { %v1002_v20 = vadd.f32 %v955_v27, %v881_v59  ;;  %v1133_v40 = vsel %vm1118_vm6, %v1130_v54, %v1132_v25  ;;  %v725_v3 = vadd.f32 %v664_v13, %v1945_v62  ;;  %v956_v9 = vrot.slane %v901_v26, 2  ;;  %v670_v62 = vpop.permute.xlu1 %669  ;;  %v672_v13 = vpop.permute.xlu0 %671 }
 0x1c3   :  { %v1179_v61 = vadd.f32 %v1131_v49, %v1074_v8  ;;  %v726_v16 = vadd.f32 %v666_v24, %v1949_v21  ;;  %v727_v63 = vadd.f32 %v668_v5, %v1869_v51  ;;  %v728_v24 = vadd.f32 %v670_v62, %v1953_v1 }
 0x1c4   :  { %v1075_v28 = vadd.f32 %v1028_v22, %v1002_v20  ;;  %v746_v55 = vmul.f32 0.054488685, %v725_v3  ;;  %v781_v57 = vmul.f32 0.24420135, %v725_v3  ;;  %v902_v32 = vmul.f32 0.40261996, %v725_v3 }
 0x1c5   :  { %v1227_v14 = vadd.f32 %v1900_v12, %v1179_v61  ;;  %v782_v30 = vmul.f32 0.24420135, %v726_v16  ;;  %v903_v31 = vmul.f32 0.40261996, %v726_v16  ;;  %v1089_v37 = vmul.f32 0.054488685, %v726_v16 }
 0x1c6   :  { %v1180_v23 = vadd.f32 %v1133_v40, %v1075_v28  ;;  %v836_v54 = vrot.slane %v781_v57, 1  ;;  %v957_v46 = vrot.slane %v902_v32, 2  ;;  %v1030_v2 = vrot.slane %v781_v57, 3  ;;  %v674_v26 = vpop.permute.xlu1 %673 }
 0x1c7   :  { %1244 = vst.msk [vmem:[#allocation8 + $0x20] sm:$0xff] %vm1239_vm7, %v1227_v14  ;;  %v1135_v21 = vrot.slane %v746_v55, 4  ;;  %v838_v0 = vrot.slane %v782_v30, 1  ;;  %v959_v51 = vrot.slane %v903_v31, 2  ;;  %v1032_v18 = vrot.slane %v782_v30, 3 }
 0x1c8   :  { %v1228_v49 = vadd.f32 %v1902_v35, %v1180_v23  ;;  %v837_v39 = vsel %vm819_vm3, %v835_v38, %v836_v54  ;;  %v958_v12 = vsel %vm940_vm4, %v956_v9, %v957_v46  ;;  %v1031_v19 = vsel %vm1013_vm5, %v1029_v6, %v1030_v2  ;;  %v676_v6 = vpop.permute.xlu0 %675 }
 0x1c9   :  { %v882_v34 = vadd.f32 %v837_v39, %v745_v41  ;;  %v1136_v53 = vsel %vm1118_vm6, %v1134_v33, %v1135_v21  ;;  %v839_v7 = vsel %vm819_vm3, %v836_v54, %v838_v0  ;;  %v960_v29 = vsel %vm940_vm4, %v957_v46, %v959_v51 }
 0x1ca   :  { %1245 = vst.msk [vmem:[#allocation8 + $0x28] sm:$0xff] %vm1239_vm7, %v1228_v49  ;;  %v883_v4 = vadd.f32 %v839_v7, %v746_v55  ;;  %v1033_v10 = vsel %vm1013_vm5, %v1030_v2, %v1032_v18  ;;  %v1137_v59 = vrot.slane %v1089_v37, 4  ;;  %v747_v35 = vmul.f32 0.054488685, %v727_v63 }
 0x1cb   :  { %v1003_v27 = vadd.f32 %v958_v12, %v882_v34  ;;  %v783_v22 = vmul.f32 0.24420135, %v727_v63  ;;  %v904_v25 = vmul.f32 0.40261996, %v727_v63  ;;  %v729_v38 = vadd.f32 %v672_v13, %v1957_v43 }
 0x1cc   :  { %v1004_v5 = vadd.f32 %v960_v29, %v883_v4  ;;  %v1138_v41 = vsel %vm1118_vm6, %v1135_v21, %v1137_v59  ;;  %v1139_v8 = vrot.slane %v747_v35, 4  ;;  %v748_v9 = vmul.f32 0.054488685, %v728_v24  ;;  %v678_v21 = vpop.permute.xlu1 %677  ;;  %v680_v0 = vpop.permute.xlu0 %679 }
 0x1cd   :  { %v1076_v20 = vadd.f32 %v1031_v19, %v1003_v27  ;;  %v840_v40 = vrot.slane %v783_v22, 1  ;;  %v961_v33 = vrot.slane %v904_v25, 2  ;;  %v1034_v3 = vrot.slane %v783_v22, 3 }
 0x1ce   :  { %v1077_v61 = vadd.f32 %v1033_v10, %v1004_v5  ;;  %v784_v16 = vmul.f32 0.24420135, %v728_v24  ;;  %v905_v28 = vmul.f32 0.40261996, %v728_v24  ;;  %v785_v63 = vmul.f32 0.24420135, %v729_v38 }
 0x1cf   :  { %v1181_v55 = vadd.f32 %v1136_v53, %v1076_v20  ;;  %v906_v57 = vmul.f32 0.40261996, %v729_v38  ;;  %v1090_v1 = vmul.f32 0.054488685, %v729_v38  ;;  %v1140_v37 = vrot.slane %v748_v9, 4 }
 0x1d0   :  { %v1182_v32 = vadd.f32 %v1138_v41, %v1077_v61  ;;  %v841_v14 = vrot.slane %v784_v16, 1  ;;  %v962_v30 = vrot.slane %v905_v28, 2  ;;  %v1035_v31 = vrot.slane %v784_v16, 3  ;;  %v682_v16 = vpop.permute.xlu1 %681  ;;  %v684_v28 = vpop.permute.xlu0 %683 }
 0x1d1   :  { %v1229_v43 = vadd.f32 %v1904_v45, %v1181_v55  ;;  %v843_v23 = vrot.slane %v785_v63, 1  ;;  %v964_v54 = vrot.slane %v906_v57, 2  ;;  %v1141_v18 = vsel %vm1118_vm6, %v1139_v8, %v1140_v37 }
 0x1d2   :  { %v1230_v46 = vadd.f32 %v1908_v11, %v1182_v32  ;;  %v842_v2 = vsel %vm819_vm3, %v840_v40, %v841_v14  ;;  %v963_v62 = vsel %vm940_vm4, %v961_v33, %v962_v30  ;;  %v1036_v13 = vsel %vm1013_vm5, %v1034_v3, %v1035_v31 }
 0x1d3   :  { %1246 = vst.msk [vmem:[#allocation8 + $0x30] sm:$0xff] %vm1239_vm7, %v1229_v43  ;;  %v884_v51 = vadd.f32 %v842_v2, %v747_v35  ;;  %v844_v45 = vsel %vm819_vm3, %v841_v14, %v843_v23  ;;  %v965_v49 = vsel %vm940_vm4, %v962_v30, %v964_v54  ;;  %v1037_v39 = vrot.slane %v785_v63, 3 }
 0x1d4   :  { %1247 = vst.msk [vmem:[#allocation8 + $0x38] sm:$0xff] %vm1239_vm7, %v1230_v46  ;;  %v885_v11 = vadd.f32 %v844_v45, %v748_v9  ;;  %v1142_v12 = vrot.slane %v1090_v1, 4  ;;  %v730_v19 = vadd.f32 %v674_v26, %v1875_v58  ;;  %v731_v53 = vadd.f32 %v676_v6, %v1877_v15 }
 0x1d5   :  { %v1005_v34 = vadd.f32 %v963_v62, %v884_v51  ;;  %v732_v7 = vadd.f32 %v678_v21, %v1879_v36  ;;  %v733_v29 = vadd.f32 %v680_v0, %v1881_v52  ;;  %v1038_v10 = vsel %vm1013_vm5, %v1035_v31, %v1037_v39  ;;  %v688_v39 = vpop.permute.xlu0 %687 }
 0x1d6   :  { %v1006_v4 = vadd.f32 %v965_v49, %v885_v11  ;;  %v1143_v59 = vsel %vm1118_vm6, %v1140_v37, %v1142_v12  ;;  %v749_v35 = vmul.f32 0.054488685, %v730_v19  ;;  %v786_v22 = vmul.f32 0.24420135, %v730_v19  ;;  %v686_v11 = vpop.permute.xlu1 %685 }
 0x1d7   :  { %v1078_v27 = vadd.f32 %v1036_v13, %v1005_v34  ;;  %v907_v25 = vmul.f32 0.40261996, %v730_v19  ;;  %v750_v24 = vmul.f32 0.054488685, %v731_v53  ;;  %v787_v58 = vmul.f32 0.24420135, %v731_v53 }
 0x1d8   :  { %v1079_v5 = vadd.f32 %v1038_v10, %v1006_v4  ;;  %v1144_v41 = vrot.slane %v749_v35, 4  ;;  %v908_v8 = vmul.f32 0.40261996, %v731_v53  ;;  %v845_v15 = vrot.slane %v786_v22, 1 }
 0x1d9   :  { %v1183_v38 = vadd.f32 %v1141_v18, %v1078_v27  ;;  %v966_v26 = vrot.slane %v907_v25, 2  ;;  %v1039_v36 = vrot.slane %v786_v22, 3  ;;  %v846_v52 = vrot.slane %v787_v58, 1 }
 0x1da   :  { %v1184_v6 = vadd.f32 %v1143_v59, %v1079_v5  ;;  %v967_v20 = vrot.slane %v908_v8, 2  ;;  %v1040_v40 = vrot.slane %v787_v58, 3  ;;  %v1145_v3 = vrot.slane %v750_v24, 4 }
 0x1db   :  { %v1231_v33 = vadd.f32 %v1910_v60, %v1183_v38  ;;  %v788_v61 = vmul.f32 0.24420135, %v732_v7  ;;  %v909_v9 = vmul.f32 0.40261996, %v732_v7  ;;  %v847_v63 = vsel %vm819_vm3, %v845_v15, %v846_v52 }
 0x1dc   :  { %v1232_v55 = vadd.f32 %v1913_v56, %v1184_v6  ;;  %v968_v57 = vsel %vm940_vm4, %v966_v26, %v967_v20  ;;  %v1041_v1 = vsel %vm1013_vm5, %v1039_v36, %v1040_v40  ;;  %v886_v32 = vadd.f32 %v847_v63, %v749_v35  ;;  %v1204_v63 = vld [vmem:[#allocation6 + $0x68] sm:$0xff] }
 0x1dd   :  { %1248 = vst.msk [vmem:[#allocation8 + $0x40] sm:$0xff] %vm1239_vm7, %v1231_v33  ;;  %v1146_v14 = vsel %vm1118_vm6, %v1144_v41, %v1145_v3  ;;  %v848_v30 = vrot.slane %v788_v61, 1  ;;  %v969_v60 = vrot.slane %v909_v9, 2  ;;  %v1042_v31 = vrot.slane %v788_v61, 3 }
 0x1de   :  { %1249 = vst.msk [vmem:[#allocation8 + $0x48] sm:$0xff] %vm1239_vm7, %v1232_v55  ;;  %v1091_v43 = vmul.f32 0.054488685, %v732_v7  ;;  %v751_v37 = vmul.f32 0.054488685, %v733_v29  ;;  %v734_v56 = vadd.f32 %v682_v16, %v1883_v50  ;;  %v1007_v23 = vadd.f32 %v968_v57, %v886_v32  ;;  %v690_v32 = vpop.permute.xlu1 %689 }
 0x1df   :  { %v849_v54 = vsel %vm819_vm3, %v846_v52, %v848_v30  ;;  %v970_v46 = vsel %vm940_vm4, %v967_v20, %v969_v60  ;;  %v789_v2 = vmul.f32 0.24420135, %v733_v29  ;;  %v1043_v13 = vsel %vm1013_vm5, %v1040_v40, %v1042_v31 }
 0x1e0   :  { %v887_v62 = vadd.f32 %v849_v54, %v750_v24  ;;  %v1147_v21 = vrot.slane %v1091_v43, 4  ;;  %v910_v0 = vmul.f32 0.40261996, %v733_v29  ;;  %v1080_v51 = vadd.f32 %v1041_v1, %v1007_v23 }
 0x1e1   :  { %v850_v18 = vrot.slane %v789_v2, 1  ;;  %v1044_v45 = vrot.slane %v789_v2, 3  ;;  %v1149_v49 = vrot.slane %v751_v37, 4  ;;  %v752_v34 = vmul.f32 0.054488685, %v734_v56 }
 0x1e2   :  { %v1008_v12 = vadd.f32 %v970_v46, %v887_v62  ;;  %v1148_v50 = vsel %vm1118_vm6, %v1145_v3, %v1147_v21  ;;  %v971_v19 = vrot.slane %v910_v0, 2  ;;  %v1185_v53 = vadd.f32 %v1146_v14, %v1080_v51  ;;  %v2079_v62 = vld [vmem:[#allocation12_spill] sm:$0xff] }
 0x1e3   :  { %v790_v7 = vmul.f32 0.24420135, %v734_v56  ;;  %v911_v4 = vmul.f32 0.40261996, %v734_v56  ;;  %v735_v10 = vadd.f32 %v684_v28, %v1885_v44  ;;  %v1150_v35 = vrot.slane %v752_v34, 4 }
 0x1e4   :  { %v1081_v59 = vadd.f32 %v1043_v13, %v1008_v12  ;;  %v736_v29 = vadd.f32 %v686_v11, %v1887_v17  ;;  %v737_v27 = vadd.f32 %v688_v39, %v1889_v48  ;;  %v1233_v22 = vadd.f32 %v1915_v42, %v1185_v53  ;;  %v1203_v42 = vld [vmem:[#allocation6 + $0x60] sm:$0xff] }
 0x1e5   :  { %v851_v25 = vrot.slane %v790_v7, 1  ;;  %v972_v24 = vrot.slane %v911_v4, 2  ;;  %v1045_v5 = vrot.slane %v790_v7, 3  ;;  %v1151_v58 = vsel %vm1118_vm6, %v1149_v49, %v1150_v35 }
 0x1e6   :  { %v1186_v41 = vadd.f32 %v1148_v50, %v1081_v59  ;;  %v791_v8 = vmul.f32 0.24420135, %v735_v10  ;;  %v912_v38 = vmul.f32 0.40261996, %v735_v10  ;;  %1250 = vst.msk [vmem:[#allocation8 + $0x50] sm:$0xff] %vm1239_vm7, %v1233_v22  ;;  %v738_v13 = vadd.f32 %v690_v32, %v2079_v62 }
 0x1e7   :  { %v852_v44 = vsel %vm819_vm3, %v850_v18, %v851_v25  ;;  %v973_v15 = vsel %vm940_vm4, %v971_v19, %v972_v24  ;;  %v1046_v17 = vsel %vm1013_vm5, %v1044_v45, %v1045_v5  ;;  %v1092_v26 = vmul.f32 0.054488685, %v735_v10 }
 0x1e8   :  { %v1234_v48 = vadd.f32 %v1917_v47, %v1186_v41  ;;  %v888_v36 = vadd.f32 %v852_v44, %v751_v37  ;;  %v853_v6 = vrot.slane %v791_v8, 1  ;;  %v974_v52 = vrot.slane %v912_v38, 2  ;;  %v1206_v44 = vld [vmem:[#allocation6 + $0x78] sm:$0xff] }
 0x1e9   :  { %v1047_v20 = vrot.slane %v791_v8, 3  ;;  %v1152_v40 = vrot.slane %v1092_v26, 4  ;;  %v753_v33 = vmul.f32 0.054488685, %v736_v29  ;;  %v792_v3 = vmul.f32 0.24420135, %v736_v29 }
 0x1ea   :  { %1251 = vst.msk [vmem:[#allocation8 + $0x58] sm:$0xff] %vm1239_vm7, %v1234_v48  ;;  %v1009_v61 = vadd.f32 %v973_v15, %v888_v36  ;;  %v854_v9 = vsel %vm819_vm3, %v851_v25, %v853_v6  ;;  %v975_v16 = vsel %vm940_vm4, %v972_v24, %v974_v52  ;;  %v913_v28 = vmul.f32 0.40261996, %v736_v29 }
 0x1eb   :  { %v1219_v55 = vmul.f32 0.1, %v1203_v42  ;;  %v889_v57 = vadd.f32 %v854_v9, %v752_v34  ;;  %v1048_v47 = vsel %vm1013_vm5, %v1045_v5, %v1047_v20  ;;  %v1153_v1 = vsel %vm1118_vm6, %v1150_v35, %v1152_v40  ;;  %v1205_v35 = vld [vmem:[#allocation6 + $0x70] sm:$0xff] }
 0x1ec   :  { %v1082_v14 = vadd.f32 %v1046_v17, %v1009_v61  ;;  %v855_v30 = vrot.slane %v792_v3, 1  ;;  %v976_v60 = vrot.slane %v913_v28, 2  ;;  %v1049_v31 = vrot.slane %v792_v3, 3 }
 0x1ed   :  { %v1010_v43 = vadd.f32 %v975_v16, %v889_v57  ;;  %v754_v37 = vmul.f32 0.054488685, %v737_v27  ;;  %v793_v56 = vmul.f32 0.24420135, %v737_v27  ;;  %v914_v23 = vmul.f32 0.40261996, %v737_v27 }
 0x1ee   :  { %v1187_v54 = vadd.f32 %v1151_v58, %v1082_v14  ;;  %v1220_v46 = vmul.f32 0.1, %v1204_v63  ;;  %v1154_v2 = vrot.slane %v753_v33, 4  ;;  %v794_v11 = vmul.f32 0.24420135, %v738_v13 }
 0x1ef   :  { %v1083_v21 = vadd.f32 %v1048_v47, %v1010_v43  ;;  %v856_v0 = vrot.slane %v793_v56, 1  ;;  %v977_v51 = vrot.slane %v914_v23, 2  ;;  %v1050_v18 = vrot.slane %v793_v56, 3 }
 0x1f0   :  { %v1235_v45 = vadd.f32 %v1219_v55, %v1187_v54  ;;  %v1155_v49 = vrot.slane %v754_v37, 4  ;;  %v915_v39 = vmul.f32 0.40261996, %v738_v13  ;;  %v858_v4 = vrot.slane %v794_v11, 1 }
 0x1f1   :  { %v1188_v12 = vadd.f32 %v1153_v1, %v1083_v21  ;;  %v857_v50 = vsel %vm819_vm3, %v855_v30, %v856_v0  ;;  %v978_v19 = vsel %vm940_vm4, %v976_v60, %v977_v51  ;;  %v1051_v34 = vsel %vm1013_vm5, %v1049_v31, %v1050_v18 }
 0x1f2   :  { %1252 = vst.msk [vmem:[#allocation8 + $0x60] sm:$0xff] %vm1239_vm7, %v1235_v45  ;;  %v890_v53 = vadd.f32 %v857_v50, %v753_v33  ;;  %v1156_v7 = vsel %vm1118_vm6, %v1154_v2, %v1155_v49  ;;  %v979_v10 = vrot.slane %v915_v39, 2  ;;  %v1052_v29 = vrot.slane %v794_v11, 3 }
 0x1f3   :  { %v1236_v59 = vadd.f32 %v1220_v46, %v1188_v12  ;;  %v1093_v27 = vmul.f32 0.054488685, %v738_v13  ;;  %v859_v25 = vsel %vm819_vm3, %v856_v0, %v858_v4  ;;  %v1221_v8 = vmul.f32 0.1, %v1205_v35 }
 0x1f4   :  { %v1011_v22 = vadd.f32 %v978_v19, %v890_v53  ;;  %v980_v24 = vsel %vm940_vm4, %v977_v51, %v979_v10  ;;  %v891_v5 = vadd.f32 %v859_v25, %v754_v37  ;;  %v1053_v41 = vsel %vm1013_vm5, %v1050_v18, %v1052_v29 }
 0x1f5   :  { %1253 = vst.msk [vmem:[#allocation8 + $0x68] sm:$0xff] %vm1239_vm7, %v1236_v59  ;;  %v1157_v58 = vrot.slane %v1093_v27, 4  ;;  %v1222_v48 = vmul.f32 0.1, %v1206_v44 }
 0x1f6   :  { %v1084_v38 = vadd.f32 %v1051_v34, %v1011_v22  ;;  %v1012_v15 = vadd.f32 %v980_v24, %v891_v5 }
 0x1f7   :  { %v1158_v17 = vsel %vm1118_vm6, %v1155_v49, %v1157_v58 }
 0x1f8   :  { %v1189_v26 = vadd.f32 %v1156_v7, %v1084_v38  ;;  %v1085_v42 = vadd.f32 %v1053_v41, %v1012_v15 }
 0x1fa   :  { %v1237_v36 = vadd.f32 %v1221_v8, %v1189_v26  ;;  %v1190_v6 = vadd.f32 %v1158_v17, %v1085_v42 }
 0x1fc   :  { %1254 = vst.msk [vmem:[#allocation8 + $0x70] sm:$0xff] %vm1239_vm7, %v1237_v36  ;;  %v1238_v52 = vadd.f32 %v1222_v48, %v1190_v6 }
 0x1fe   :  { %1255 = vst.msk [vmem:[#allocation8 + $0x78] sm:$0xff] %vm1239_vm7, %v1238_v52 }
 0x1ff   :  { %1336 = shalt.err (!%p1333_p0)
}
 0x200   :  { %1267 = dma.vmem_to_hbm [thread:$0]  %s1262_s25, 2048, %s2077_s2, [#allocation5], %s1352_s12, %s1352_s12, %s1353_s13  }
 0x201   :  { %1349 = dma.done.wait [#allocation5], 2048  }
 0x202   :  { %1350 = vsyncadd [#allocation5], 4294965248 }
 0x203   :  { %1271 = vsyncpa [#allocation4], 1 }
 0x204   :  { %1272 = vsyncpa [#allocation7], 1 }
 0x205   :  { %1273 = vsyncpa [#allocation5], 1 }

</bundles_post_ra>
